<compile_context>
chip_gen: v5e
topology: v5e:2x2
jax: 0.10.0
libtpu: 0.0.40
codegen_flags: <defaults>
</compile_context>

<pallas_src>
import jax
import jax.numpy as jnp
from jax.experimental import pallas as pl
from jax.experimental.pallas import tpu as pltpu


def _round_up(n: int, m: int) -> int:
    return ((n + m - 1) // m) * m


def _vmem_budget_bytes() -> int:
    """~13/16 of per-core VMEM: headroom for compiler scratch & pipelining."""
    try:
        cap = int(pltpu.get_tpu_info().vmem_capacity_bytes)
    except Exception:
        cap = 64 * 1024 * 1024  # conservative fallback (safe on every gen)
    return (cap * 13) // 16


def _pick_tf(f_pad: int, tf_max: int) -> int:
    """Largest multiple of 128 <= tf_max that divides f_pad (f_pad % 128 == 0)."""
    tf_max = max(128, (min(tf_max, f_pad) // 128) * 128)
    for cand in range(tf_max, 127, -128):
        if f_pad % cand == 0:
            return cand
    return 128


def _vmem_footprint(tm: int, tf: int, d_pad: int, itemsize: int,
                    single_pass: bool) -> int:
    x_bytes = 2 * tm * d_pad * itemsize        # double-buffered activation tile
    out_bytes = 2 * tm * d_pad * itemsize      # double-buffered output tile
    w_bytes = 2 * 2 * tf * d_pad * itemsize    # W1^T + W2^T slices, 2-deep
    b_bytes = 2 * (tf + d_pad) * itemsize
    h_bytes = tm * tf * 4                      # f32 hidden temp
    acc_bytes = 0 if single_pass else tm * d_pad * 4
    return x_bytes + out_bytes + w_bytes + b_bytes + h_bytes + acc_bytes


def _ffn_kernel_single(x_ref, w1_ref, b1_ref, w2_ref, b2_ref, o_ref):
    # Weights fully resident in VMEM: one pass over F, no accumulator RMW.
    h = jnp.dot(x_ref[...], w1_ref[...], preferred_element_type=jnp.float32)
    h = jnp.maximum(h + b1_ref[...].astype(jnp.float32), 0.0)
    out = jnp.dot(h.astype(w2_ref.dtype), w2_ref[...],
                  preferred_element_type=jnp.float32)
    o_ref[...] = (out + b2_ref[...].astype(jnp.float32)).astype(o_ref.dtype)


def _ffn_kernel_multi(x_ref, w1_ref, b1_ref, w2_ref, b2_ref, o_ref, acc_ref):
    # F is tiled: reduce partial h @ W2^T slices into an f32 VMEM accumulator.
    f = pl.program_id(1)

    h = jnp.dot(x_ref[...], w1_ref[...], preferred_element_type=jnp.float32)
    h = jnp.maximum(h + b1_ref[...].astype(jnp.float32), 0.0)
    contrib = jnp.dot(h.astype(w2_ref.dtype), w2_ref[...],
                      preferred_element_type=jnp.float32)

    @pl.when(f == 0)
    def _():
        acc_ref[...] = contrib          # direct write: no zero-init pass

    @pl.when(f > 0)
    def _():
        acc_ref[...] += contrib

    @pl.when(f == pl.num_programs(1) - 1)
    def _():
        o_ref[...] = (acc_ref[...]
                      + b2_ref[...].astype(jnp.float32)).astype(o_ref.dtype)


def make_feed_forward(w1, b1, w2, b2, *, tm=512, tf=512, compute_dtype=None):
    """One-time parameter prep (transpose + pad, outside the hot path) and a
    jitted forward: x (B, S, D) -> (B, S, D).

    w1: (F, D), b1: (F,), w2: (D, F), b2: (D,)  -- PyTorch nn.Linear layout.
    compute_dtype: optionally cast operands (e.g. jnp.bfloat16) for the MXU
    path; default None keeps the caller's dtype (exact PyTorch semantics).
    """
    F, D = w1.shape
    assert w2.shape == (D, F) and b1.shape == (F,) and b2.shape == (D,)

    w_dtype = compute_dtype if compute_dtype is not None else w1.dtype
    itemsize = jnp.dtype(w_dtype).itemsize

    d_pad = _round_up(D, 128)          # lane-dense output / MXU-friendly N
    f_pad = _round_up(F, 128)
    budget = _vmem_budget_bytes()

    # Plan: weights-resident single pass if it fits, else F-tiled reduction.
    tm_final = max(8, (tm // 8) * 8)
    if _vmem_footprint(tm_final, f_pad, d_pad, itemsize, True) <= budget:
        tf_final, grid_f = f_pad, 1
    else:
        tf_final = _pick_tf(f_pad, tf)
        grid_f = f_pad // tf_final
        while _vmem_footprint(tm_final, tf_final, d_pad, itemsize,
                              False) > budget:
            if tm_final > 128:
                tm_final //= 2
            elif tf_final > 128:
                tf_final = _pick_tf(f_pad, tf_final // 2)
                grid_f = f_pad // tf_final
            else:
                break

    # One-time weight transpose + pad (exact: padded rows/cols are zero, and
    # relu(0) contributes nothing; padded output columns are sliced off).
    w1t = jnp.pad(jnp.transpose(w1), ((0, d_pad - D), (0, f_pad - F)))
    w2t = jnp.pad(jnp.transpose(w2), ((0, f_pad - F), (0, d_pad - D)))
    b1p = jnp.pad(b1, (0, f_pad - F)).reshape(1, f_pad)
    b2p = jnp.pad(b2, (0, d_pad - D)).reshape(1, d_pad)
    if compute_dtype is not None:
        w1t = w1t.astype(compute_dtype)
        w2t = w2t.astype(compute_dtype)

    @jax.jit
    def forward(x):
        B, S, d_in = x.shape
        assert d_in == D, "x last dim inconsistent with weights"
        M = B * S
        x2d = x.reshape(M, D)
        if compute_dtype is not None:
            x2d = x2d.astype(compute_dtype)

        # Row-tile: clamp to M, but keep >= 2 i-tiles when M is big enough so
        # the v7x megacore can shard the parallel axis across both TCs.
        m_aligned = max(8, _round_up(M, 8))
        tm_call = min(tm_final, m_aligned)
        if tm_call == m_aligned and M >= 256:
            tm_call = _round_up((M + 1) // 2, 8)
        m_pad = _round_up(M, tm_call)

        if m_pad != M or d_pad != D:
            x2d = jnp.pad(x2d, ((0, m_pad - M), (0, d_pad - D)))

        n_i = m_pad // tm_call
        grid = (n_i, grid_f)

        act_itemsize = jnp.dtype(x2d.dtype).itemsize
        out_itemsize = jnp.dtype(x.dtype).itemsize
        weight_bytes = int(w1t.nbytes) + int(w2t.nbytes)
        if grid_f > 1:
            weight_bytes *= n_i            # weights re-streamed per i-tile
        cost = pl.CostEstimate(
            flops=4 * m_pad * f_pad * d_pad,
            transcendentals=0,
            bytes_accessed=(weight_bytes
                            + x2d.size * act_itemsize
                            + m_pad * d_pad * out_itemsize
                            + int(b1p.nbytes) + int(b2p.nbytes)),
        )

        kernel = _ffn_kernel_single if grid_f == 1 else _ffn_kernel_multi
        scratch = ([] if grid_f == 1
                   else [pltpu.VMEM((tm_call, d_pad), jnp.float32)])

        out2d = pl.pallas_call(
            kernel,
            out_shape=jax.ShapeDtypeStruct((m_pad, d_pad), x.dtype),
            grid_spec=pltpu.PrefetchScalarGridSpec(
                num_scalar_prefetch=0,
                grid=grid,
                in_specs=[
                    pl.BlockSpec((tm_call, d_pad), lambda i, f: (i, 0)),   # x
                    pl.BlockSpec((d_pad, tf_final), lambda i, f: (0, f)),  # W1^T
                    pl.BlockSpec((1, tf_final), lambda i, f: (0, f)),      # b1
                    pl.BlockSpec((tf_final, d_pad), lambda i, f: (f, 0)),  # W2^T
                    pl.BlockSpec((1, d_pad), lambda i, f: (0, 0)),         # b2
                ],
                out_specs=pl.BlockSpec((tm_call, d_pad), lambda i, f: (i, 0)),
                scratch_shapes=scratch,
            ),
            compiler_params=pltpu.CompilerParams(
                dimension_semantics=("parallel", "arbitrary"),
                vmem_limit_bytes=int(budget),
            ),
            cost_estimate=cost,
        )(x2d, w1t, b1p, w2t, b2p)

        return out2d[:M, :D].reshape(B, S, D)

    return forward


if __name__ == "__main__":
    # Small shapes consistent with the module: (batch, seq_len, d_model),
    # dim_feedforward.
    batch, seq_len, d_model, dim_feedforward = 2, 8, 32, 128

    key = jax.random.PRNGKey(0)
    kx, k1, k2, k3, k4 = jax.random.split(key, 5)

    x = jax.random.normal(kx, (batch, seq_len, d_model), dtype=jnp.float32)
    w1 = jax.random.normal(k1, (dim_feedforward, d_model), dtype=jnp.float32) * 0.1
    b1 = jax.random.normal(k2, (dim_feedforward,), dtype=jnp.float32) * 0.1
    w2 = jax.random.normal(k3, (d_model, dim_feedforward), dtype=jnp.float32) * 0.1
    b2 = jax.random.normal(k4, (d_model,), dtype=jnp.float32) * 0.1

    ffn = make_feed_forward(w1, b1, w2, b2)
    out = jax.block_until_ready(ffn(x))

    # Plain-JAX reference of the PyTorch forward.
    h_ref = jnp.maximum(jnp.einsum("bsd,fd->bsf", x, w1) + b1, 0.0)
    ref = jnp.einsum("bsf,df->bsd", h_ref, w2) + b2

    assert out.shape == (batch, seq_len, d_model)
    assert jnp.allclose(out, ref, atol=1e-4, rtol=1e-4)

    print("KERNEL_OK")
</pallas_src>

<mosaic_0001>
module attributes {stable_mosaic.version = 11 : i64} {
  func.func @_ffn_kernel_single(%arg0: i32, %arg1: i32, %arg2: memref<16x128xf32, #tpu.memory_space<vmem>>, %arg3: memref<128x128xf32, #tpu.memory_space<vmem>>, %arg4: memref<1x128xf32, #tpu.memory_space<vmem>>, %arg5: memref<128x128xf32, #tpu.memory_space<vmem>>, %arg6: memref<1x128xf32, #tpu.memory_space<vmem>>, %arg7: memref<16x128xf32, #tpu.memory_space<vmem>>) attributes {dimension_semantics = [#tpu.dimension_semantics<parallel>, #tpu.dimension_semantics<arbitrary>], iteration_bounds = array<i64: 1, 1>, scalar_prefetch = 0 : i64, scratch_operands = 0 : i64, tpu.core_type = #tpu.core_type<tc>, window_params = [{transform_indices = @transform_0, window_bounds = array<i64: 16, 128>}, {transform_indices = @transform_1, window_bounds = array<i64: 128, 128>}, {transform_indices = @transform_2, window_bounds = array<i64: 1, 128>}, {transform_indices = @transform_3, window_bounds = array<i64: 128, 128>}, {pipeline_mode = #tpu.pipeline_mode<synchronous>, transform_indices = @transform_4, window_bounds = array<i64: 1, 128>}, {transform_indices = @transform_5, window_bounds = array<i64: 16, 128>}]} {
    %c0 = arith.constant 0 : index
    %c0_0 = arith.constant 0 : index
    %0 = vector.load %arg2[%c0, %c0_0] : memref<16x128xf32, #tpu.memory_space<vmem>>, vector<16x128xf32>
    %c0_1 = arith.constant 0 : index
    %c0_2 = arith.constant 0 : index
    %1 = vector.load %arg3[%c0_1, %c0_2] : memref<128x128xf32, #tpu.memory_space<vmem>>, vector<128x128xf32>
    %cst = arith.constant dense<0.000000e+00> : vector<16x128xf32>
    %2 = tpu.matmul %0, %1, %cst {dimension_numbers = #tpu.dot_dimension_numbers<[1], [0], [0], [1], [0, 0, 1, 1], [], []>} : vector<16x128xf32>, vector<128x128xf32>, vector<16x128xf32> -> vector<16x128xf32>
    %c0_3 = arith.constant 0 : index
    %c0_4 = arith.constant 0 : index
    %3 = vector.load %arg4[%c0_3, %c0_4] : memref<1x128xf32, #tpu.memory_space<vmem>>, vector<1x128xf32>
    %4 = vector.broadcast %3 : vector<1x128xf32> to vector<16x128xf32>
    %5 = arith.addf %2, %4 : vector<16x128xf32>
    %cst_5 = arith.constant 0.000000e+00 : f32
    %6 = vector.broadcast %cst_5 : f32 to vector<16x128xf32>
    %7 = arith.maximumf %5, %6 : vector<16x128xf32>
    %c0_6 = arith.constant 0 : index
    %c0_7 = arith.constant 0 : index
    %8 = vector.load %arg5[%c0_6, %c0_7] : memref<128x128xf32, #tpu.memory_space<vmem>>, vector<128x128xf32>
    %cst_8 = arith.constant dense<0.000000e+00> : vector<16x128xf32>
    %9 = tpu.matmul %7, %8, %cst_8 {dimension_numbers = #tpu.dot_dimension_numbers<[1], [0], [0], [1], [0, 0, 1, 1], [], []>} : vector<16x128xf32>, vector<128x128xf32>, vector<16x128xf32> -> vector<16x128xf32>
    %c0_9 = arith.constant 0 : index
    %c0_10 = arith.constant 0 : index
    %10 = vector.load %arg6[%c0_9, %c0_10] : memref<1x128xf32, #tpu.memory_space<vmem>>, vector<1x128xf32>
    %11 = vector.broadcast %10 : vector<1x128xf32> to vector<16x128xf32>
    %12 = arith.addf %9, %11 : vector<16x128xf32>
    %c0_11 = arith.constant 0 : index
    %c0_12 = arith.constant 0 : index
    %13 = vector.load %arg7[%c0_11, %c0_12] : memref<16x128xf32, #tpu.memory_space<vmem>>, vector<16x128xf32>
    tpu.vector_store %arg7[%c0_11, %c0_12], %12 {strides = array<i32>} : memref<16x128xf32, #tpu.memory_space<vmem>>, vector<16x128xf32>,
    return
  }
  func.func @transform_0(%arg0: i32, %arg1: i32) -> (i32, i32) {
    %c0_i32 = arith.constant 0 : i32
    %c0_i32_0 = arith.constant 0 : i32
    return %arg0, %c0_i32 : i32, i32
  }
  func.func @transform_1(%arg0: i32, %arg1: i32) -> (i32, i32) {
    %c0_i32 = arith.constant 0 : i32
    %c0_i32_0 = arith.constant 0 : i32
    return %c0_i32, %arg1 : i32, i32
  }
  func.func @transform_2(%arg0: i32, %arg1: i32) -> (i32, i32) {
    %c0_i32 = arith.constant 0 : i32
    %c0_i32_0 = arith.constant 0 : i32
    return %c0_i32, %arg1 : i32, i32
  }
  func.func @transform_3(%arg0: i32, %arg1: i32) -> (i32, i32) {
    %c0_i32 = arith.constant 0 : i32
    %c0_i32_0 = arith.constant 0 : i32
    return %arg1, %c0_i32 : i32, i32
  }
  func.func @transform_4(%arg0: i32, %arg1: i32) -> (i32, i32) {
    %c0_i32 = arith.constant 0 : i32
    %c0_i32_0 = arith.constant 0 : i32
    %c0_i32_1 = arith.constant 0 : i32
    return %c0_i32, %c0_i32_0 : i32, i32
  }
  func.func @transform_5(%arg0: i32, %arg1: i32) -> (i32, i32) {
    %c0_i32 = arith.constant 0 : i32
    %c0_i32_0 = arith.constant 0 : i32
    return %arg0, %c0_i32 : i32, i32
  }
}

</mosaic_0001>

<bundles_post_ra>
// kernel: forward.1
= control target key start
LH: loop header
LB: loop body
LE: loop exit
PB: predicated region body
PF: predicated region fallthrough
CT: control target
= control target key end

     0   :  { %10 = vsyncpa [#allocation3], 0  ;;  %s298_s0 = inlined_call_operand.vmem [shape: f32[16,128], index: 0, kind: input, shape index: {}]   ;;  %s299_s1 = inlined_call_operand.hbm [shape: f32[128,128], index: 1, kind: input, shape index: {}]   ;;  %s300_s2 = inlined_call_operand.vmem [shape: f32[1,128], index: 2, kind: input, shape index: {}]   ;;  %s301_s3 = inlined_call_operand.hbm [shape: f32[128,128], index: 3, kind: input, shape index: {}]   ;;  %s302_s4 = inlined_call_operand.vmem [shape: f32[1,128], index: 4, kind: input, shape index: {}]   ;;  %s303_s5 = inlined_call_operand.vmem [shape: f32[16,128], index: 5, kind: output, shape index: {}]  }
   0x1   :  { %s18_s20 = sshll.u32 %s299_s1, 4  ;;  %s19_s20 = int_to_ptr.hbm [resolvable:$true] %s18_s20 }
   0x2   :  { %11 = vsyncpa [#allocation5], 0  ;;  %s240_s21 = smov [#allocation2]   ;;  %s33_s25 = sshll.u32 %s301_s3, 4  ;;  %s34_s25 = int_to_ptr.hbm [resolvable:$true] %s33_s25 }
   0x3   :  { %s20_s22 = sshll.u32 %s240_s21, 4  ;;  %s241_s26 = smov 128   ;;  %s21_s22 = int_to_ptr.vmem [resolvable:$true] %s20_s22 }
   0x4   :  { %s242_s27 = smov 8   ;;  %s243_s28 = smov [#allocation4]  }
   0x5   :  { %26 = dma.hbm_to_vmem [thread:$0]  %s19_s20, 2048, %s21_s22, [#allocation3], %s241_s26, %s241_s26, %s242_s27  }
   0x6   :  { %s35_s29 = sshll.u32 %s243_s28, 4  ;;  %s36_s29 = int_to_ptr.vmem [resolvable:$true] %s35_s29 }
   0x7   :  { %41 = dma.hbm_to_vmem [thread:$0]  %s34_s25, 2048, %s36_s29, [#allocation5], %s241_s26, %s241_s26, %s242_s27  }
   0x8   :  { %236 = dma.done.wait [#allocation3], 2048  }
   0x9   :  { %237 = vsyncadd [#allocation3], 4294965248 }
   0xa   :  { %238 = dma.done.wait [#allocation5], 2048  }
   0xb   :  { %239 = vsyncadd [#allocation5], 4294965248  ;;  %v69_v0 = vld [vmem:[#allocation2 + $0x78] sm:$0xff]  ;;  %v68_v1 = vld [vmem:[#allocation2 + $0x70] sm:$0xff] }
   0xc   :  { %150 = vmatpush.msra.mxu2 %v69_v0  ;;  %74 = vmatpush.msra.mxu0 %v69_v0  ;;  %v67_v2 = vld [vmem:[#allocation2 + $0x68] sm:$0xff]  ;;  %v66_v3 = vld [vmem:[#allocation2 + $0x60] sm:$0xff]  ;;  %v65_v4 = vld [vmem:[#allocation2 + $0x58] sm:$0xff] }
   0xd   :  { %v114_v5 = vld [vmem:[#allocation4 + $0x78] sm:$0xff]  ;;  %v113_v6 = vld [vmem:[#allocation4 + $0x70] sm:$0xff]  ;;  %v112_v8 = vld [vmem:[#allocation4 + $0x68] sm:$0xff] }
   0xe   :  { %151 = vmatpush.msra.mxu2 %v68_v1  ;;  %75 = vmatpush.msra.mxu0 %v68_v1  ;;  %v64_v7 = vld [vmem:[#allocation2 + $0x50] sm:$0xff]  ;;  %v63_v9 = vld [vmem:[#allocation2 + $0x48] sm:$0xff]  ;;  %v111_v10 = vld [vmem:[#allocation4 + $0x60] sm:$0xff] }
   0xf   :  { %166 = vmatpush.msra.mxu3 %v114_v5  ;;  %119 = vmatpush.msra.mxu1 %v114_v5  ;;  %v62_v11 = vld [vmem:[#allocation2 + $0x40] sm:$0xff]  ;;  %v110_v12 = vld [vmem:[#allocation4 + $0x58] sm:$0xff]  ;;  %v109_v14 = vld [vmem:[#allocation4 + $0x50] sm:$0xff] }
  0x10   :  { %152 = vmatpush.msra.mxu2 %v67_v2  ;;  %76 = vmatpush.msra.mxu0 %v67_v2  ;;  %v61_v13 = vld [vmem:[#allocation2 + $0x38] sm:$0xff]  ;;  %v60_v15 = vld [vmem:[#allocation2 + $0x30] sm:$0xff]  ;;  %v108_v16 = vld [vmem:[#allocation4 + $0x48] sm:$0xff] }
  0x11   :  { %167 = vmatpush.msra.mxu3 %v113_v6  ;;  %120 = vmatpush.msra.mxu1 %v113_v6  ;;  %v59_v17 = vld [vmem:[#allocation2 + $0x28] sm:$0xff]  ;;  %v107_v18 = vld [vmem:[#allocation4 + $0x40] sm:$0xff]  ;;  %v106_v20 = vld [vmem:[#allocation4 + $0x38] sm:$0xff] }
  0x12   :  { %153 = vmatpush.msra.mxu2 %v66_v3  ;;  %77 = vmatpush.msra.mxu0 %v66_v3  ;;  %v58_v19 = vld [vmem:[#allocation2 + $0x20] sm:$0xff]  ;;  %v57_v21 = vld [vmem:[#allocation2 + $0x18] sm:$0xff]  ;;  %v105_v22 = vld [vmem:[#allocation4 + $0x30] sm:$0xff] }
  0x13   :  { %168 = vmatpush.msra.mxu3 %v112_v8  ;;  %121 = vmatpush.msra.mxu1 %v112_v8  ;;  %v56_v23 = vld [vmem:[#allocation2 + $0x10] sm:$0xff]  ;;  %v104_v24 = vld [vmem:[#allocation4 + $0x28] sm:$0xff]  ;;  %v103_v26 = vld [vmem:[#allocation4 + $0x20] sm:$0xff] }
  0x14   :  { %154 = vmatpush.msra.mxu2 %v65_v4  ;;  %78 = vmatpush.msra.mxu0 %v65_v4  ;;  %v55_v25 = vld [vmem:[#allocation2 + $0x8] sm:$0xff]  ;;  %v54_v27 = vld [vmem:[#allocation2] sm:$0xff]  ;;  %v102_v30 = vld [vmem:[#allocation4 + $0x18] sm:$0xff] }
  0x15   :  { %169 = vmatpush.msra.mxu3 %v111_v10  ;;  %122 = vmatpush.msra.mxu1 %v111_v10  ;;  %v53_v28 = vld [vmem:[%s298_s0 + $0x8] sm:$0xff]  ;;  %v52_v29 = vld [vmem:[%s298_s0] sm:$0xff]  ;;  %v101_v31 = vld [vmem:[#allocation4 + $0x10] sm:$0xff] }
  0x16   :  { %155 = vmatpush.msra.mxu2 %v64_v7  ;;  %79 = vmatpush.msra.mxu0 %v64_v7  ;;  %v100_v32 = vld [vmem:[#allocation4 + $0x8] sm:$0xff]  ;;  %v99_v33 = vld [vmem:[#allocation4] sm:$0xff] }
  0x17   :  { %170 = vmatpush.msra.mxu3 %v110_v12  ;;  %123 = vmatpush.msra.mxu1 %v110_v12  ;;  %v186_v34 = vld [vmem:[%s300_s2] ss:$0 sm:$0xff] }
  0x18   :  { %156 = vmatpush.msra.mxu2 %v63_v9  ;;  %80 = vmatpush.msra.mxu0 %v63_v9  ;;  %v187_v41 = vld [vmem:[%s302_s4] ss:$0 sm:$0xff] }
  0x19   :  { %171 = vmatpush.msra.mxu3 %v109_v14  ;;  %124 = vmatpush.msra.mxu1 %v109_v14 }
  0x1a   :  { %157 = vmatpush.msra.mxu2 %v62_v11  ;;  %81 = vmatpush.msra.mxu0 %v62_v11 }
  0x1b   :  { %172 = vmatpush.msra.mxu3 %v108_v16  ;;  %125 = vmatpush.msra.mxu1 %v108_v16 }
  0x1c   :  { %158 = vmatpush.msra.mxu2 %v61_v13  ;;  %82 = vmatpush.msra.mxu0 %v61_v13 }
  0x1d   :  { %173 = vmatpush.msra.mxu3 %v107_v18  ;;  %126 = vmatpush.msra.mxu1 %v107_v18 }
  0x1e   :  { %159 = vmatpush.msra.mxu2 %v60_v15  ;;  %83 = vmatpush.msra.mxu0 %v60_v15 }
  0x1f   :  { %174 = vmatpush.msra.mxu3 %v106_v20  ;;  %127 = vmatpush.msra.mxu1 %v106_v20 }
  0x20   :  { %160 = vmatpush.msra.mxu2 %v59_v17  ;;  %84 = vmatpush.msra.mxu0 %v59_v17 }
  0x21   :  { %175 = vmatpush.msra.mxu3 %v105_v22  ;;  %128 = vmatpush.msra.mxu1 %v105_v22 }
  0x22   :  { %161 = vmatpush.msra.mxu2 %v58_v19  ;;  %85 = vmatpush.msra.mxu0 %v58_v19 }
  0x23   :  { %176 = vmatpush.msra.mxu3 %v104_v24  ;;  %129 = vmatpush.msra.mxu1 %v104_v24 }
  0x24   :  { %162 = vmatpush.msra.mxu2 %v57_v21  ;;  %86 = vmatpush.msra.mxu0 %v57_v21 }
  0x25   :  { %177 = vmatpush.msra.mxu3 %v103_v26  ;;  %130 = vmatpush.msra.mxu1 %v103_v26 }
  0x26   :  { %163 = vmatpush.msra.mxu2 %v56_v23  ;;  %87 = vmatpush.msra.mxu0 %v56_v23 }
  0x27   :  { %178 = vmatpush.msra.mxu3 %v102_v30  ;;  %131 = vmatpush.msra.mxu1 %v102_v30 }
  0x28   :  { %164 = vmatpush.msra.mxu2 %v55_v25  ;;  %88 = vmatpush.msra.mxu0 %v55_v25 }
  0x29   :  { %179 = vmatpush.msra.mxu3 %v101_v31  ;;  %132 = vmatpush.msra.mxu1 %v101_v31 }
  0x2a   :  { %165 = vmatpush.msra.mxu2 %v54_v27  ;;  %89 = vmatpush.msra.mxu0 %v54_v27 }
  0x2b   :  { %93 = vmatmul.f32.vlgmr.msra.gmra.mxu2 %v53_v28  ;;  %90 = vmatmul.f32.vlgmr.msra.gmra.mxu0 %v52_v29 }
  0x2c   :  { %180 = vmatpush.msra.mxu3 %v100_v32  ;;  %133 = vmatpush.msra.mxu1 %v100_v32 }
  0x2e   :  { %181 = vmatpush.msra.mxu3 %v99_v33  ;;  %134 = vmatpush.msra.mxu1 %v99_v33 }
  0xa8   :  { %v91_v35 = vpop.f32.mrf.mxu0 }
  0xa9   :  { %v92_v36 = vadd.f32 %v186_v34, %v91_v35 }
  0xab   :  { %v97_v37 = vmax.f32 %v92_v36, 0.0 }
  0xad   :  { %135 = vmatmul.f32.vlgmr.msra.gmra.mxu1 %v97_v37 }
  0xae   :  { %v94_v38 = vpop.f32.mrf.mxu2 }
  0xaf   :  { %v95_v39 = vadd.f32 %v186_v34, %v94_v38 }
  0xb1   :  { %v98_v40 = vmax.f32 %v95_v39, 0.0 }
  0xb3   :  { %138 = vmatmul.f32.vlgmr.msra.gmra.mxu3 %v98_v40 }
 0x12a   :  { %v136_v42 = vpop.f32.mrf.mxu1 }
 0x12b   :  { %v137_v43 = vadd.f32 %v187_v41, %v136_v42 }
 0x12d   :  { %142 = vst [vmem:[%s303_s5] sm:$0xff] %v137_v43 }
 0x136   :  { %v139_v44 = vpop.f32.mrf.mxu3 }
 0x137   :  { %v140_v45 = vadd.f32 %v187_v41, %v139_v44 }
 0x139   :  { %143 = vst [vmem:[%s303_s5 + $0x8] sm:$0xff] %v140_v45 }
 0x13a   :  { %148 = vsyncpa [#allocation3], 1 }
 0x13b   :  { %149 = vsyncpa [#allocation5], 1 }

</bundles_post_ra>
